<compile_context>
chip_gen: v7x
topology: tpu7x:2x2x1
jax: 0.10.0
libtpu: 0.0.40
codegen_flags: <defaults>
</compile_context>

<pallas_src>
import jax
import jax.numpy as jnp
from jax.experimental import pallas as pl
from jax.experimental.pallas import tpu as pltpu

# Small, module-consistent sizes.
BATCH = 8            # number of "sentences"
BERT_HIDDEN = 128    # stand-in for bert hidden_size (768 in the real model)
EMB_DIM = 256        # embedding_dim of TextEncoder.fc / CoordinateGenerator input
H1, H2, H3, OUT = 512, 256, 128, 5   # CoordinateGenerator MLP dims
OUT_PAD = 128        # lane-dense padded output width (slice [:, :OUT] outside)


def text_to_3d_kernel(
    x_ref,                      # (B, BERT_HIDDEN) CLS embeddings, f32
    wf_ref, bf_ref,             # fused (fc + generator Linear(256,512)): (128,512) bf16 / (1,512) f32
    w2_ref, b2_ref,             # generator Linear(512, 256): bf16 / f32
    w3_ref, b3_ref,             # generator Linear(256, 128): bf16 / f32
    w4_ref, b4_ref,             # generator Linear(128, 5) padded to 128 cols: bf16 / f32
    o_ref,                      # (B, OUT_PAD) output (cols >= OUT are zero-ish)
):
    # bf16 MXU operands, f32 accumulation; VPU work (bias add, ReLU) stays f32.
    x = x_ref[...].astype(jnp.bfloat16)

    h = jnp.dot(x, wf_ref[...], preferred_element_type=jnp.float32) + bf_ref[...]
    h = jnp.maximum(h, 0.0)                                    # Dropout = identity (eval)

    h = jnp.dot(h.astype(jnp.bfloat16), w2_ref[...],
                preferred_element_type=jnp.float32) + b2_ref[...]
    h = jnp.maximum(h, 0.0)

    h = jnp.dot(h.astype(jnp.bfloat16), w3_ref[...],
                preferred_element_type=jnp.float32) + b3_ref[...]
    h = jnp.maximum(h, 0.0)

    out = jnp.dot(h.astype(jnp.bfloat16), w4_ref[...],
                  preferred_element_type=jnp.float32) + b4_ref[...]

    o_ref[...] = out.astype(o_ref.dtype)


def _full_spec(shape):
    # Full-array block (no tiling): block_shape == array shape, single grid point.
    return pl.BlockSpec(shape, lambda: tuple(0 for _ in shape))


def text_to_3d_forward(cls_emb, params):
    """params: dict with wfc,bfc,w1,b1,w2,b2,w3,b3,w4,b4 (biases shaped (1, N))."""
    B = cls_emb.shape[0]

    # --- wrapper-side prep (pure affine algebra, done in f32) ----------------
    # Fuse the activation-free TextEncoder.fc into the first generator layer.
    w_fused = params["wfc"] @ params["w1"]                      # (BERT_HIDDEN, H1)
    b_fused = params["bfc"] @ params["w1"] + params["b1"]       # (1, H1)

    # Pad the 5-wide final layer to a lane-dense OUT_PAD columns.
    w4_pad = jnp.zeros((H3, OUT_PAD), jnp.float32).at[:, :OUT].set(params["w4"])
    b4_pad = jnp.zeros((1, OUT_PAD), jnp.float32).at[:, :OUT].set(params["b4"])

    args = (
        cls_emb.astype(jnp.float32),
        w_fused.astype(jnp.bfloat16), b_fused.astype(jnp.float32),
        params["w2"].astype(jnp.bfloat16), params["b2"].astype(jnp.float32),
        params["w3"].astype(jnp.bfloat16), params["b3"].astype(jnp.float32),
        w4_pad.astype(jnp.bfloat16), b4_pad.astype(jnp.float32),
    )
    in_specs = [_full_spec(a.shape) for a in args]

    # Advisory cost hint for XLA scheduling around this tiny custom call.
    flops = 2 * B * (BERT_HIDDEN * H1 + H1 * H2 + H2 * H3 + H3 * OUT_PAD)
    bytes_accessed = sum(a.size * a.dtype.itemsize for a in args) + B * OUT_PAD * 4
    cost = pl.CostEstimate(flops=flops, transcendentals=0,
                           bytes_accessed=bytes_accessed)

    out_padded = pl.pallas_call(
        text_to_3d_kernel,
        out_shape=jax.ShapeDtypeStruct((B, OUT_PAD), jnp.float32),
        grid=(),
        in_specs=in_specs,
        out_specs=_full_spec((B, OUT_PAD)),
        compiler_params=pltpu.CompilerParams(vmem_limit_bytes=8 << 20),
        cost_estimate=cost,
    )(*args)

    return out_padded[:, :OUT]


def init_params(key):
    """Deterministic PyTorch-style init: U(-1/sqrt(fan_in), 1/sqrt(fan_in))."""
    dims = [
        ("wfc", "bfc", BERT_HIDDEN, EMB_DIM),
        ("w1", "b1", EMB_DIM, H1),
        ("w2", "b2", H1, H2),
        ("w3", "b3", H2, H3),
        ("w4", "b4", H3, OUT),
    ]
    params = {}
    keys = jax.random.split(key, 2 * len(dims))
    for i, (wname, bname, fan_in, fan_out) in enumerate(dims):
        bound = 1.0 / (fan_in ** 0.5)
        params[wname] = jax.random.uniform(
            keys[2 * i], (fan_in, fan_out), jnp.float32, -bound, bound)
        params[bname] = jax.random.uniform(
            keys[2 * i + 1], (1, fan_out), jnp.float32, -bound, bound)
    return params


def reference_same_numerics(cls_emb, p):
    """Mirrors the kernel's fusion + bf16-operand / f32-accumulation numerics."""
    w_fused = (p["wfc"] @ p["w1"]).astype(jnp.bfloat16)
    b_fused = p["bfc"] @ p["w1"] + p["b1"]

    def bdot(a, w):
        return jnp.dot(a.astype(jnp.bfloat16), w.astype(jnp.bfloat16),
                       preferred_element_type=jnp.float32)

    h = jnp.maximum(bdot(cls_emb, w_fused) + b_fused, 0.0)
    h = jnp.maximum(bdot(h, p["w2"]) + p["b2"], 0.0)
    h = jnp.maximum(bdot(h, p["w3"]) + p["b3"], 0.0)
    return bdot(h, p["w4"]) + p["b4"]


def reference_f32(cls_emb, p):
    """Pure f32, unfused reference (module semantics)."""
    h = cls_emb @ p["wfc"] + p["bfc"]
    h = jnp.maximum(h @ p["w1"] + p["b1"], 0.0)
    h = jnp.maximum(h @ p["w2"] + p["b2"], 0.0)
    h = jnp.maximum(h @ p["w3"] + p["b3"], 0.0)
    return h @ p["w4"] + p["b4"]


if __name__ == "__main__":
    key = jax.random.PRNGKey(0)
    k_x, k_p = jax.random.split(key)

    # Stand-in for BERT CLS embeddings of BATCH sentences.
    cls_emb = jax.random.normal(k_x, (BATCH, BERT_HIDDEN), jnp.float32)
    params = init_params(k_p)

    out = text_to_3d_forward(cls_emb, params)
    out = jax.block_until_ready(out)
    assert out.shape == (BATCH, OUT)

    # Kernel fidelity check (same bf16/fusion numerics as the kernel).
    ref_bf16 = reference_same_numerics(cls_emb, params)
    assert jnp.allclose(out, ref_bf16, atol=2e-3, rtol=2e-3)

    # Semantic sanity vs. the pure-f32 module forward (bf16 quantization slack).
    ref_f32 = reference_f32(cls_emb, params)
    assert jnp.allclose(out, ref_f32, atol=5e-2, rtol=5e-2)

    print("KERNEL_OK")
</pallas_src>

<mosaic_0001>
module attributes {stable_mosaic.version = 11 : i64} {
  func.func @text_to_3d_kernel(%arg0: memref<8x128xf32, #tpu.memory_space<vmem>>, %arg1: memref<128x512xbf16, #tpu.memory_space<vmem>>, %arg2: memref<1x512xf32, #tpu.memory_space<vmem>>, %arg3: memref<512x256xbf16, #tpu.memory_space<vmem>>, %arg4: memref<1x256xf32, #tpu.memory_space<vmem>>, %arg5: memref<256x128xbf16, #tpu.memory_space<vmem>>, %arg6: memref<1x128xf32, #tpu.memory_space<vmem>>, %arg7: memref<128x128xbf16, #tpu.memory_space<vmem>>, %arg8: memref<1x128xf32, #tpu.memory_space<vmem>>, %arg9: memref<8x128xf32, #tpu.memory_space<vmem>>) attributes {dimension_semantics = [], scalar_prefetch = 0 : i64, scratch_operands = 0 : i64, tpu.core_type = #tpu.core_type<tc>} {
    %c0 = arith.constant 0 : index
    %c0_0 = arith.constant 0 : index
    %0 = vector.load %arg0[%c0, %c0_0] : memref<8x128xf32, #tpu.memory_space<vmem>>, vector<8x128xf32>
    %1 = arith.truncf %0 : vector<8x128xf32> to vector<8x128xbf16>
    %c0_1 = arith.constant 0 : index
    %c0_2 = arith.constant 0 : index
    %2 = vector.load %arg1[%c0_1, %c0_2] : memref<128x512xbf16, #tpu.memory_space<vmem>>, vector<128x512xbf16>
    %cst = arith.constant dense<0.000000e+00> : vector<8x512xf32>
    %3 = tpu.matmul %1, %2, %cst {dimension_numbers = #tpu.dot_dimension_numbers<[1], [0], [0], [1], [0, 0, 1, 1], [], []>} : vector<8x128xbf16>, vector<128x512xbf16>, vector<8x512xf32> -> vector<8x512xf32>
    %c0_3 = arith.constant 0 : index
    %c0_4 = arith.constant 0 : index
    %4 = vector.load %arg2[%c0_3, %c0_4] : memref<1x512xf32, #tpu.memory_space<vmem>>, vector<1x512xf32>
    %5 = vector.broadcast %4 : vector<1x512xf32> to vector<8x512xf32>
    %6 = arith.addf %3, %5 : vector<8x512xf32>
    %cst_5 = arith.constant 0.000000e+00 : f32
    %7 = vector.broadcast %cst_5 : f32 to vector<8x512xf32>
    %8 = arith.maximumf %6, %7 : vector<8x512xf32>
    %9 = arith.truncf %8 : vector<8x512xf32> to vector<8x512xbf16>
    %c0_6 = arith.constant 0 : index
    %c0_7 = arith.constant 0 : index
    %10 = vector.load %arg3[%c0_6, %c0_7] : memref<512x256xbf16, #tpu.memory_space<vmem>>, vector<512x256xbf16>
    %cst_8 = arith.constant dense<0.000000e+00> : vector<8x256xf32>
    %11 = tpu.matmul %9, %10, %cst_8 {dimension_numbers = #tpu.dot_dimension_numbers<[1], [0], [0], [1], [0, 0, 1, 1], [], []>} : vector<8x512xbf16>, vector<512x256xbf16>, vector<8x256xf32> -> vector<8x256xf32>
    %c0_9 = arith.constant 0 : index
    %c0_10 = arith.constant 0 : index
    %12 = vector.load %arg4[%c0_9, %c0_10] : memref<1x256xf32, #tpu.memory_space<vmem>>, vector<1x256xf32>
    %13 = vector.broadcast %12 : vector<1x256xf32> to vector<8x256xf32>
    %14 = arith.addf %11, %13 : vector<8x256xf32>
    %cst_11 = arith.constant 0.000000e+00 : f32
    %15 = vector.broadcast %cst_11 : f32 to vector<8x256xf32>
    %16 = arith.maximumf %14, %15 : vector<8x256xf32>
    %17 = arith.truncf %16 : vector<8x256xf32> to vector<8x256xbf16>
    %c0_12 = arith.constant 0 : index
    %c0_13 = arith.constant 0 : index
    %18 = vector.load %arg5[%c0_12, %c0_13] : memref<256x128xbf16, #tpu.memory_space<vmem>>, vector<256x128xbf16>
    %cst_14 = arith.constant dense<0.000000e+00> : vector<8x128xf32>
    %19 = tpu.matmul %17, %18, %cst_14 {dimension_numbers = #tpu.dot_dimension_numbers<[1], [0], [0], [1], [0, 0, 1, 1], [], []>} : vector<8x256xbf16>, vector<256x128xbf16>, vector<8x128xf32> -> vector<8x128xf32>
    %c0_15 = arith.constant 0 : index
    %c0_16 = arith.constant 0 : index
    %20 = vector.load %arg6[%c0_15, %c0_16] : memref<1x128xf32, #tpu.memory_space<vmem>>, vector<1x128xf32>
    %21 = vector.broadcast %20 : vector<1x128xf32> to vector<8x128xf32>
    %22 = arith.addf %19, %21 : vector<8x128xf32>
    %cst_17 = arith.constant 0.000000e+00 : f32
    %23 = vector.broadcast %cst_17 : f32 to vector<8x128xf32>
    %24 = arith.maximumf %22, %23 : vector<8x128xf32>
    %25 = arith.truncf %24 : vector<8x128xf32> to vector<8x128xbf16>
    %c0_18 = arith.constant 0 : index
    %c0_19 = arith.constant 0 : index
    %26 = vector.load %arg7[%c0_18, %c0_19] : memref<128x128xbf16, #tpu.memory_space<vmem>>, vector<128x128xbf16>
    %cst_20 = arith.constant dense<0.000000e+00> : vector<8x128xf32>
    %27 = tpu.matmul %25, %26, %cst_20 {dimension_numbers = #tpu.dot_dimension_numbers<[1], [0], [0], [1], [0, 0, 1, 1], [], []>} : vector<8x128xbf16>, vector<128x128xbf16>, vector<8x128xf32> -> vector<8x128xf32>
    %c0_21 = arith.constant 0 : index
    %c0_22 = arith.constant 0 : index
    %28 = vector.load %arg8[%c0_21, %c0_22] : memref<1x128xf32, #tpu.memory_space<vmem>>, vector<1x128xf32>
    %29 = vector.broadcast %28 : vector<1x128xf32> to vector<8x128xf32>
    %30 = arith.addf %27, %29 : vector<8x128xf32>
    %c0_23 = arith.constant 0 : index
    %c0_24 = arith.constant 0 : index
    %31 = vector.load %arg9[%c0_23, %c0_24] : memref<8x128xf32, #tpu.memory_space<vmem>>, vector<8x128xf32>
    tpu.vector_store %arg9[%c0_23, %c0_24], %30 {strides = array<i32>} : memref<8x128xf32, #tpu.memory_space<vmem>>, vector<8x128xf32>,
    return
  }
}

</mosaic_0001>

<bundles_post_ra>
// kernel: tpu_custom_call.1
= control target key start
LH: loop header
LB: loop body
LE: loop exit
PB: predicated region body
PF: predicated region fallthrough
CT: control target
= control target key end

     0   :  { %14 = vsyncpa [#allocation3], 0  ;;  %s1882_s0 = inlined_call_operand.hbm [shape: f32[8,128], index: 0, kind: input, shape index: {}]   ;;  %s1883_s1 = inlined_call_operand.hbm [shape: bf16[128,512], index: 1, kind: input, shape index: {}]   ;;  %s1884_s2 = inlined_call_operand.vmem [shape: f32[1,512], index: 2, kind: input, shape index: {}]   ;;  %s1885_s3 = inlined_call_operand.hbm [shape: bf16[512,256], index: 3, kind: input, shape index: {}]   ;;  %s1886_s4 = inlined_call_operand.vmem [shape: f32[1,256], index: 4, kind: input, shape index: {}]   ;;  %s1887_s5 = inlined_call_operand.hbm [shape: bf16[256,128], index: 5, kind: input, shape index: {}]   ;;  %s1888_s6 = inlined_call_operand.vmem [shape: f32[1,128], index: 6, kind: input, shape index: {}]   ;;  %s1889_s7 = inlined_call_operand.hbm [shape: bf16[128,128], index: 7, kind: input, shape index: {}]   ;;  %s1890_s8 = inlined_call_operand.vmem [shape: f32[1,128], index: 8, kind: input, shape index: {}]   ;;  %s1891_s9 = inlined_call_operand.hbm [shape: f32[8,128], index: 9, kind: output, shape index: {}]  }
   0x1   :  { %15 = vsyncpa [#allocation6], 0 }
   0x2   :  { %16 = vsyncpa [#allocation9], 0 }
   0x3   :  { %17 = vsyncpa [#allocation4], 0  ;;  %s1696_s30 = smov [#allocation5]   ;;  %s1556_s13 = scalar_lea.hbm %s1883_s1, 4096 }
   0x4   :  { %s33_s10 = sshll.u32 %s1696_s30, 4  ;;  %p1557_p0 = scmp.ne.s32.totalorder %s1883_s1, %s1556_s13  ;;  %s34_s10 = int_to_ptr.vmem [resolvable:$true] %s33_s10 }
   0x5   :  { %p1560_p1 = scmp.lt.u32.totalorder %s1556_s13, %s1883_s1 }
   0x7   :  { %p1562_p2 = pnand %p1560_p1, %p1557_p0 }
   0x9   :  { %1565 = shalt.err (!%p1562_p2)
}
   0xa   :  { %s1566_s18 = scalar_lea.vmem %s34_s10, 4096  ;;  %p1571_p4 = scmp.lt.s32.totalorder %s34_s10, %s34_s10 }
   0xb   :  { %p1567_p3 = scmp.ne.s32.totalorder %s34_s10, %s1566_s18  ;;  %p1572_p5 = scmp.lt.s32.totalorder %s1566_s18, %s1566_s18 }
   0xd   :  { %p1573_p6 = por %p1572_p5, %p1571_p4 }
   0xf   :  { %p1574_p7 = pnand %p1573_p6, %p1567_p3 }
  0x11   :  { %1577 = shalt.err (!%p1574_p7)
}
  0x12   :  { %s1697_s19 = smov 256   ;;  %s1698_s20 = smov 16  }
  0x13   :  { %39 = dma.hbm_to_vmem [thread:$0]  %s1883_s1, 4096, %s34_s10, [#allocation6], %s1697_s19, %s1697_s19, %s1698_s20  }
  0x14   :  { %s1699_s23 = smov [#allocation8]   ;;  %s1578_s27 = scalar_lea.hbm %s1887_s5, 2048 }
  0x15   :  { %s61_s24 = sshll.u32 %s1699_s23, 4  ;;  %p1579_p8 = scmp.ne.s32.totalorder %s1887_s5, %s1578_s27  ;;  %s62_s24 = int_to_ptr.vmem [resolvable:$true] %s61_s24 }
  0x16   :  { %p1582_p9 = scmp.lt.u32.totalorder %s1578_s27, %s1887_s5 }
  0x18   :  { %p1584_p10 = pnand %p1582_p9, %p1579_p8 }
  0x1a   :  { %1587 = shalt.err (!%p1584_p10)
}
  0x1b   :  { %s1588_s12 = scalar_lea.vmem %s62_s24, 2048  ;;  %p1593_p12 = scmp.lt.s32.totalorder %s62_s24, %s62_s24 }
  0x1c   :  { %p1589_p11 = scmp.ne.s32.totalorder %s62_s24, %s1588_s12  ;;  %p1594_p13 = scmp.lt.s32.totalorder %s1588_s12, %s1588_s12 }
  0x1e   :  { %p1595_p0 = por %p1594_p13, %p1593_p12 }
  0x20   :  { %p1596_p1 = pnand %p1595_p0, %p1589_p11 }
  0x22   :  { %1599 = shalt.err (!%p1596_p1)
}
  0x23   :  { %s1700_s1 = smov 64   ;;  %s1701_s10 = smov 4  }
  0x24   :  { %67 = dma.hbm_to_vmem [thread:$0]  %s1887_s5, 2048, %s62_s24, [#allocation9], %s1700_s1, %s1700_s1, %s1701_s10  }
  0x25   :  { %s1702_s15 = smov [#allocation2]   ;;  %s1703_s17 = smov [#allocation7]  }
  0x26   :  { %s24_s16 = sshll.u32 %s1702_s15, 4  ;;  %s47_s18 = sshll.u32 %s1703_s17, 4  ;;  %s25_s16 = int_to_ptr.vmem [resolvable:$true] %s24_s16  ;;  %s1788_s18 = int_to_ptr.vmem [resolvable:$true] %s47_s18 }
  0x27   :  { %s1600_s21 = scalar_lea.hbm %s1882_s0, 128 }
  0x28   :  { %p1601_p2 = scmp.ne.s32.totalorder %s1882_s0, %s1600_s21  ;;  %p1604_p3 = scmp.lt.u32.totalorder %s1600_s21, %s1882_s0 }
  0x2a   :  { %p1606_p4 = pnand %p1604_p3, %p1601_p2 }
  0x2c   :  { %1609 = shalt.err (!%p1606_p4)
}
  0x2d   :  { %s1610_s5 = scalar_lea.vmem %s25_s16, 128  ;;  %p1615_p6 = scmp.lt.s32.totalorder %s25_s16, %s25_s16 }
  0x2e   :  { %p1611_p5 = scmp.ne.s32.totalorder %s25_s16, %s1610_s5  ;;  %p1616_p7 = scmp.lt.s32.totalorder %s1610_s5, %s1610_s5 }
  0x30   :  { %p1617_p8 = por %p1616_p7, %p1615_p6 }
  0x32   :  { %p1618_p9 = pnand %p1617_p8, %p1611_p5 }
  0x34   :  { %1621 = shalt.err (!%p1618_p9)
}
  0x35   :  { %27 = dma.hbm_to_vmem [thread:$0]  %s1882_s0, 128, %s25_s16, [#allocation3]  }
  0x36   :  { %s1622_s30 = scalar_lea.hbm %s1885_s3, 8192 }
  0x37   :  { %p1623_p10 = scmp.ne.s32.totalorder %s1885_s3, %s1622_s30  ;;  %p1626_p11 = scmp.lt.u32.totalorder %s1622_s30, %s1885_s3 }
  0x39   :  { %p1628_p12 = pnand %p1626_p11, %p1623_p10 }
  0x3b   :  { %1631 = shalt.err (!%p1628_p12)
}
  0x3c   :  { %s1632_s15 = scalar_lea.vmem %s1788_s18, 8192  ;;  %p1637_p0 = scmp.lt.s32.totalorder %s1788_s18, %s1788_s18 }
  0x3d   :  { %p1633_p13 = scmp.ne.s32.totalorder %s1788_s18, %s1632_s15  ;;  %p1638_p1 = scmp.lt.s32.totalorder %s1632_s15, %s1632_s15 }
  0x3f   :  { %p1639_p2 = por %p1638_p1, %p1637_p0 }
  0x41   :  { %p1640_p3 = pnand %p1639_p2, %p1633_p13 }
  0x43   :  { %1643 = shalt.err (!%p1640_p3)
}
  0x44   :  { %s1704_s0 = smov 128   ;;  %s1705_s16 = smov 8  }
  0x45   :  { %53 = dma.hbm_to_vmem [thread:$0]  %s1885_s3, 8192, %s1788_s18, [#allocation6], %s1704_s0, %s1704_s0, %s1705_s16  }
  0x46   :  { %s1706_s20 = smov [#allocation10]   ;;  %s1644_s25 = scalar_lea.hbm %s1889_s7, 1024 }
  0x47   :  { %s75_s21 = sshll.u32 %s1706_s20, 4  ;;  %p1645_p4 = scmp.ne.s32.totalorder %s1889_s7, %s1644_s25  ;;  %s76_s21 = int_to_ptr.vmem [resolvable:$true] %s75_s21 }
  0x48   :  { %p1648_p5 = scmp.lt.u32.totalorder %s1644_s25, %s1889_s7 }
  0x4a   :  { %p1650_p6 = pnand %p1648_p5, %p1645_p4 }
  0x4c   :  { %1653 = shalt.err (!%p1650_p6)
}
  0x4d   :  { %s1654_s28 = scalar_lea.vmem %s76_s21, 1024  ;;  %p1659_p8 = scmp.lt.s32.totalorder %s76_s21, %s76_s21 }
  0x4e   :  { %p1655_p7 = scmp.ne.s32.totalorder %s76_s21, %s1654_s28  ;;  %p1660_p9 = scmp.lt.s32.totalorder %s1654_s28, %s1654_s28 }
  0x50   :  { %p1661_p10 = por %p1660_p9, %p1659_p8 }
  0x52   :  { %p1662_p11 = pnand %p1661_p10, %p1655_p7 }
  0x54   :  { %1665 = shalt.err (!%p1662_p11)
}
  0x55   :  { %81 = dma.hbm_to_vmem [thread:$0]  %s1889_s7, 1024, %s76_s21, [#allocation9], %s1700_s1, %s1700_s1, %s1701_s10  }
  0x56   :  { %1688 = dma.done.wait [#allocation3], 128  }
  0x57   :  { %1689 = vsyncadd [#allocation3], 4294967168 }
  0x58   :  { %1690 = dma.done.wait [#allocation6], 12288  }
  0x59   :  { %1691 = vsyncadd [#allocation6], 4294955008 }
  0x5a   :  { %1692 = dma.done.wait [#allocation9], 3072  }
  0x5b   :  { %1693 = vsyncadd [#allocation9], 4294964224  ;;  %v1707_v0 = vmov 0   ;;  %v1388_v1 = vld [vmem:[#allocation5 + $0x4] ss:$16 sps:$4 sm:$0xff]   ;;  %v100_v22 = vld [vmem:[#allocation2] sm:$0xff] }
  0x5c   :  { %348 = vmatprep.mubr.bf16.mxu1 %v1707_v0  ;;  %v1390_v2 = vld [vmem:[#allocation5] ss:$16 sps:$4 sm:$0xff]   ;;  %316 = vmatprep.subr.bf16.mxu1 %v1388_v1  ;;  %v1391_v3 = vld [vmem:[#allocation5 + $0x24] ss:$16 sps:$4 sm:$0xff]   ;;  %v1414_v23 = vld [vmem:[#allocation5 + $0xc] ss:$16 sps:$4 sm:$0xff]   ;;  %v1834_v25 = vpack.c.bf16 %v100_v22, %v100_v22 }
  0x5d   :  { %317 = vmatpush1.bf16.msra.mxu1 %v1390_v2  ;;  %v1393_v4 = vld [vmem:[#allocation5 + $0x20] ss:$16 sps:$4 sm:$0xff]   ;;  %v1394_v5 = vld [vmem:[#allocation5 + $0x44] ss:$16 sps:$4 sm:$0xff]   ;;  %v1412_v27 = vld [vmem:[#allocation5 + $0x8] ss:$16 sps:$4 sm:$0xff]  }
  0x5e   :  { %318 = vmatprep.subr.bf16.mxu1 %v1391_v3  ;;  %v1396_v6 = vld [vmem:[#allocation5 + $0x40] ss:$16 sps:$4 sm:$0xff]   ;;  %v1397_v7 = vld [vmem:[#allocation5 + $0x64] ss:$16 sps:$4 sm:$0xff]   ;;  %v1417_v28 = vld [vmem:[#allocation5 + $0x2c] ss:$16 sps:$4 sm:$0xff]  }
  0x5f   :  { %v1399_v8 = vld [vmem:[#allocation5 + $0x60] ss:$16 sps:$4 sm:$0xff]   ;;  %v1400_v9 = vld [vmem:[#allocation5 + $0x84] ss:$16 sps:$4 sm:$0xff]   ;;  %v1415_v31 = vld [vmem:[#allocation5 + $0x28] ss:$16 sps:$4 sm:$0xff]  }
  0x60   :  { %v1402_v10 = vld [vmem:[#allocation5 + $0x80] ss:$16 sps:$4 sm:$0xff]   ;;  %v1403_v11 = vld [vmem:[#allocation5 + $0xa4] ss:$16 sps:$4 sm:$0xff]   ;;  %v1420_v32 = vld [vmem:[#allocation5 + $0x4c] ss:$16 sps:$4 sm:$0xff]  }
  0x61   :  { %319 = vmatpush1.bf16.msra.mxu1 %v1393_v4  ;;  %v1405_v12 = vld [vmem:[#allocation5 + $0xa0] ss:$16 sps:$4 sm:$0xff]   ;;  %v1406_v13 = vld [vmem:[#allocation5 + $0xc4] ss:$16 sps:$4 sm:$0xff]   ;;  %v1418_v34 = vld [vmem:[#allocation5 + $0x48] ss:$16 sps:$4 sm:$0xff]  }
  0x62   :  { %320 = vmatprep.subr.bf16.mxu1 %v1394_v5  ;;  %v1408_v14 = vld [vmem:[#allocation5 + $0xc0] ss:$16 sps:$4 sm:$0xff]   ;;  %v1436_v15 = vld [vmem:[#allocation7 + $0x4] ss:$8 sps:$4 sm:$0xff]   ;;  %v1439_v17 = vld [vmem:[#allocation7 + $0x14] ss:$8 sps:$4 sm:$0xff]  }
  0x63   :  { %v1438_v16 = vld [vmem:[#allocation7] ss:$8 sps:$4 sm:$0xff]   ;;  %v1409_v18 = vld [vmem:[#allocation5 + $0xe4] ss:$16 sps:$4 sm:$0xff]   ;;  %802 = vmatprep.subr.bf16.mxu0 %v1436_v15  ;;  %v1441_v19 = vld [vmem:[#allocation7 + $0x10] ss:$8 sps:$4 sm:$0xff]  }
  0x64   :  { %803 = vmatpush1.bf16.msra.mxu0 %v1438_v16  ;;  %v1411_v20 = vld [vmem:[#allocation5 + $0xe0] ss:$16 sps:$4 sm:$0xff]   ;;  %v1442_v21 = vld [vmem:[#allocation7 + $0x24] ss:$8 sps:$4 sm:$0xff]   ;;  %v1445_v26 = vld [vmem:[#allocation7 + $0x34] ss:$8 sps:$4 sm:$0xff]   ;;  %v136_v16 = vlaneseq }
  0x65   :  { %321 = vmatpush1.bf16.msra.mxu1 %v1396_v6  ;;  %804 = vmatprep.subr.bf16.mxu0 %v1439_v17  ;;  %v1444_v24 = vld [vmem:[#allocation7 + $0x20] ss:$8 sps:$4 sm:$0xff]   ;;  %v1447_v29 = vld [vmem:[#allocation7 + $0x30] ss:$8 sps:$4 sm:$0xff]   ;;  %v1448_v30 = vld [vmem:[#allocation7 + $0x44] ss:$8 sps:$4 sm:$0xff]  }
  0x66   :  { %322 = vmatprep.subr.bf16.mxu1 %v1397_v7  ;;  %v1450_v33 = vld [vmem:[#allocation7 + $0x40] ss:$8 sps:$4 sm:$0xff]   ;;  %v1451_v35 = vld [vmem:[#allocation7 + $0x54] ss:$8 sps:$4 sm:$0xff]   ;;  %v1453_v37 = vld [vmem:[#allocation7 + $0x50] ss:$8 sps:$4 sm:$0xff]  }
  0x67   :  { %v1423_v36 = vld [vmem:[#allocation5 + $0x6c] ss:$16 sps:$4 sm:$0xff]   ;;  %v1421_v39 = vld [vmem:[#allocation5 + $0x68] ss:$16 sps:$4 sm:$0xff]   ;;  %v1532_v4 = vld [vmem:[#allocation8 + $0x40] sm:$0xff]   ;;  %v1838_v17 = vshrl.u32 %v136_v16, 7 }
  0x68   :  { %805 = vmatpush1.bf16.msra.mxu0 %v1441_v19  ;;  %v1454_v38 = vld [vmem:[#allocation7 + $0x64] ss:$8 sps:$4 sm:$0xff]   ;;  %v1456_v41 = vld [vmem:[#allocation7 + $0x60] ss:$8 sps:$4 sm:$0xff]   ;;  %v1457_v42 = vld [vmem:[#allocation7 + $0x74] ss:$8 sps:$4 sm:$0xff]  }
  0x69   :  { %323 = vmatpush1.bf16.msra.mxu1 %v1399_v8  ;;  %806 = vmatprep.subr.bf16.mxu0 %v1442_v21  ;;  %v1426_v40 = vld [vmem:[#allocation5 + $0x8c] ss:$16 sps:$4 sm:$0xff]   ;;  %v1424_v43 = vld [vmem:[#allocation5 + $0x88] ss:$16 sps:$4 sm:$0xff]   ;;  %v1533_v5 = vld [vmem:[#allocation8] sm:$0xff]   ;;  %vm1709_vm0 = vmmov 0  }
  0x6a   :  { %324 = vmatprep.subr.bf16.mxu1 %v1400_v9  ;;  %v1429_v44 = vld [vmem:[#allocation5 + $0xac] ss:$16 sps:$4 sm:$0xff]   ;;  %v1459_v45 = vld [vmem:[#allocation7 + $0x70] ss:$8 sps:$4 sm:$0xff]   ;;  %v1462_v49 = vld [vmem:[#allocation7 + $0x80] ss:$8 sps:$4 sm:$0xff]  }
  0x6b   :  { %v1460_v46 = vld [vmem:[#allocation7 + $0x84] ss:$8 sps:$4 sm:$0xff]   ;;  %v1427_v47 = vld [vmem:[#allocation5 + $0xa8] ss:$16 sps:$4 sm:$0xff]   ;;  %v1463_v50 = vld [vmem:[#allocation7 + $0x94] ss:$8 sps:$4 sm:$0xff]  }
  0x6c   :  { %807 = vmatpush1.bf16.msra.mxu0 %v1444_v24  ;;  %v1432_v48 = vld [vmem:[#allocation5 + $0xcc] ss:$16 sps:$4 sm:$0xff]   ;;  %v1430_v51 = vld [vmem:[#allocation5 + $0xc8] ss:$16 sps:$4 sm:$0xff]   ;;  %v1536_v8 = vld [vmem:[#allocation8 + $0x50] sm:$0xff]   ;;  %s1710_s12 = smov [#allocation11]  }
  0x6d   :  { %325 = vmatpush1.bf16.msra.mxu1 %v1402_v10  ;;  %808 = vmatprep.subr.bf16.mxu0 %v1445_v26  ;;  %v1435_v52 = vld [vmem:[#allocation5 + $0xec] ss:$16 sps:$4 sm:$0xff]   ;;  %v1465_v53 = vld [vmem:[#allocation7 + $0x90] ss:$8 sps:$4 sm:$0xff]   ;;  %v1468_v56 = vld [vmem:[#allocation7 + $0xa0] ss:$8 sps:$4 sm:$0xff]  }
  0x6e   :  { %326 = vmatprep.subr.bf16.mxu1 %v1403_v11  ;;  %v1466_v54 = vld [vmem:[#allocation7 + $0xa4] ss:$8 sps:$4 sm:$0xff]   ;;  %v1433_v55 = vld [vmem:[#allocation5 + $0xe8] ss:$16 sps:$4 sm:$0xff]   ;;  %v1469_v57 = vld [vmem:[#allocation7 + $0xb4] ss:$8 sps:$4 sm:$0xff]  }
  0x6f   :  { %v1471_v58 = vld [vmem:[#allocation7 + $0xb0] ss:$8 sps:$4 sm:$0xff]   ;;  %v1472_v59 = vld [vmem:[#allocation7 + $0xc4] ss:$8 sps:$4 sm:$0xff]   ;;  %v1474_v60 = vld [vmem:[#allocation7 + $0xc0] ss:$8 sps:$4 sm:$0xff]  }
  0x70   :  { %809 = vmatpush1.bf16.msra.mxu0 %v1447_v29  ;;  %v1475_v61 = vld [vmem:[#allocation7 + $0xd4] ss:$8 sps:$4 sm:$0xff]   ;;  %v1477_v62 = vld [vmem:[#allocation7 + $0xd0] ss:$8 sps:$4 sm:$0xff]   ;;  %v1478_v63 = vld [vmem:[#allocation7 + $0xe4] ss:$8 sps:$4 sm:$0xff]  }
  0x71   :  { %327 = vmatpush1.bf16.msra.mxu1 %v1405_v12  ;;  %810 = vmatprep.subr.bf16.mxu0 %v1448_v30  ;;  %v1481_v1 = vld [vmem:[#allocation7 + $0xf4] ss:$8 sps:$4 sm:$0xff]   ;;  %v1483_v2 = vld [vmem:[#allocation7 + $0xf0] ss:$8 sps:$4 sm:$0xff]   ;;  %v1486_v3 = vld [vmem:[#allocation7 + $0x104] ss:$8 sps:$4 sm:$0xff]  }
  0x72   :  { %328 = vmatprep.subr.bf16.mxu1 %v1406_v13  ;;  %v1534_v6 = vld [vmem:[#allocation8 + $0x48] sm:$0xff]   ;;  %v1537_v9 = vld [vmem:[#allocation8 + $0x10] sm:$0xff]   ;;  %v1538_v10 = vld [vmem:[#allocation8 + $0x58] sm:$0xff]   ;;  %s1183_s13 = sshll.u32 %s1710_s12, 4  ;;  %s1184_s13 = int_to_ptr.vmem [resolvable:$true] %s1183_s13 }
  0x73   :  { %v1535_v7 = vld [vmem:[#allocation8 + $0x8] sm:$0xff]   ;;  %v1539_v11 = vld [vmem:[#allocation8 + $0x18] sm:$0xff]   ;;  %v1540_v12 = vld [vmem:[#allocation8 + $0x60] sm:$0xff]   ;;  %p1671_p13 = scmp.lt.s32.totalorder %s1184_s13, %s1184_s13 }
  0x74   :  { %811 = vmatpush1.bf16.msra.mxu0 %v1450_v33  ;;  %v1541_v13 = vld [vmem:[#allocation8 + $0x20] sm:$0xff]   ;;  %v1543_v15 = vld [vmem:[#allocation8 + $0x28] sm:$0xff]   ;;  %v1844_v19 = vld [vmem:[%s1884_s2] sm:$0xf] }
  0x75   :  { %329 = vmatpush1.bf16.msra.mxu1 %v1408_v14  ;;  %812 = vmatprep.subr.bf16.mxu0 %v1451_v35  ;;  %v1542_v14 = vld [vmem:[#allocation8 + $0x68] sm:$0xff]   ;;  %v1487_v35 = vld [vmem:[#allocation7 + $0x110] ss:$8 sps:$4 sm:$0xff]  }
  0x76   :  { %330 = vmatprep.subr.bf16.mxu1 %v1409_v18  ;;  %v138_v18 = vsub.s32 0, %v1838_v17  ;;  %v1546_v16 = vld [vmem:[#allocation8 + $0x78] sm:$0xff]  }
  0x78   :  { %813 = vmatpush1.bf16.msra.mxu0 %v1453_v37  ;;  %v139_v21 = vrot.slane %v1844_v19, %v138_v18  ;;  %v1490_v37 = vld [vmem:[#allocation7 + $0x120] ss:$8 sps:$4 sm:$0xff]  }
  0x79   :  { %331 = vmatpush1.bf16.msra.mxu1 %v1411_v20  ;;  %814 = vmatprep.subr.bf16.mxu0 %v1454_v38  ;;  %v142_v20 = vsub.s32 1, %v1838_v17  ;;  %v1495_v38 = vld [vmem:[#allocation7 + $0x134] ss:$8 sps:$4 sm:$0xff]  }
  0x7a   :  { %357 = vmatprep.subr.bf16.mxu1 %v1414_v23 }
  0x7b   :  { %v143_v22 = vrot.slane %v1844_v19, %v142_v20 }
  0x7c   :  { %349 = vmatmul.mubr.bf16.vlgmr.msra.gmra.mrb[0].mxu1 %v1834_v25  ;;  %815 = vmatpush1.bf16.msra.mxu0 %v1456_v41  ;;  %v1496_v41 = vld [vmem:[#allocation7 + $0x140] ss:$8 sps:$4 sm:$0xff]  }
  0x7d   :  { %358 = vmatpush1.bf16.msra.mxu1 %v1412_v27  ;;  %389 = vmatprep.mubr.bf16.mxu1 %v1707_v0  ;;  %v1480_v0 = vld [vmem:[#allocation7 + $0xe0] ss:$8 sps:$4 sm:$0xff]  }
  0x7e   :  { %359 = vmatprep.subr.bf16.mxu1 %v1417_v28  ;;  %816 = vmatprep.subr.bf16.mxu0 %v1457_v42  ;;  %v1501_v42 = vld [vmem:[#allocation7 + $0x154] ss:$8 sps:$4 sm:$0xff]  }
  0x80   :  { %817 = vmatpush1.bf16.msra.mxu0 %v1459_v45  ;;  %v1504_v45 = vld [vmem:[#allocation7 + $0x164] ss:$8 sps:$4 sm:$0xff]  }
  0x81   :  { %360 = vmatpush1.bf16.msra.mxu1 %v1415_v31  ;;  %818 = vmatprep.subr.bf16.mxu0 %v1460_v46  ;;  %v1502_v46 = vld [vmem:[#allocation7 + $0x160] ss:$8 sps:$4 sm:$0xff]  }
  0x82   :  { %361 = vmatprep.subr.bf16.mxu1 %v1420_v32  ;;  %v1484_v32 = vld [vmem:[#allocation7 + $0x100] ss:$8 sps:$4 sm:$0xff]  }
  0x84   :  { %819 = vmatpush1.bf16.msra.mxu0 %v1462_v49 }
  0x85   :  { %362 = vmatpush1.bf16.msra.mxu1 %v1418_v34  ;;  %820 = vmatprep.subr.bf16.mxu0 %v1463_v50  ;;  %v1489_v34 = vld [vmem:[#allocation7 + $0x114] ss:$8 sps:$4 sm:$0xff]  }
  0x86   :  { %363 = vmatprep.subr.bf16.mxu1 %v1423_v36  ;;  %v1492_v36 = vld [vmem:[#allocation7 + $0x124] ss:$8 sps:$4 sm:$0xff]  }
  0x88   :  { %821 = vmatpush1.bf16.msra.mxu0 %v1465_v53 }
  0x89   :  { %364 = vmatpush1.bf16.msra.mxu1 %v1421_v39  ;;  %822 = vmatprep.subr.bf16.mxu0 %v1466_v54  ;;  %v1493_v39 = vld [vmem:[#allocation7 + $0x130] ss:$8 sps:$4 sm:$0xff]   ;;  %v1510_v54 = vld [vmem:[#allocation7 + $0x184] ss:$8 sps:$4 sm:$0xff]  }
  0x8a   :  { %365 = vmatprep.subr.bf16.mxu1 %v1426_v40  ;;  %v1498_v40 = vld [vmem:[#allocation7 + $0x144] ss:$8 sps:$4 sm:$0xff]  }
  0x8c   :  { %823 = vmatpush1.bf16.msra.mxu0 %v1468_v56 }
  0x8d   :  { %366 = vmatpush1.bf16.msra.mxu1 %v1424_v43  ;;  %824 = vmatprep.subr.bf16.mxu0 %v1469_v57  ;;  %v1499_v43 = vld [vmem:[#allocation7 + $0x150] ss:$8 sps:$4 sm:$0xff]   ;;  %v1508_v57 = vld [vmem:[#allocation7 + $0x180] ss:$8 sps:$4 sm:$0xff]  }
  0x8e   :  { %367 = vmatprep.subr.bf16.mxu1 %v1429_v44  ;;  %v150_v44 = vsub.s32 3, %v1838_v17 }
  0x90   :  { %825 = vmatpush1.bf16.msra.mxu0 %v1471_v58 }
  0x91   :  { %368 = vmatpush1.bf16.msra.mxu1 %v1427_v47  ;;  %826 = vmatprep.subr.bf16.mxu0 %v1472_v59  ;;  %v151_v47 = vrot.slane %v1844_v19, %v150_v44  ;;  %v1513_v59 = vld [vmem:[#allocation7 + $0x194] ss:$8 sps:$4 sm:$0xff]  }
  0x92   :  { %369 = vmatprep.subr.bf16.mxu1 %v1432_v48  ;;  %v1507_v48 = vld [vmem:[#allocation7 + $0x174] ss:$8 sps:$4 sm:$0xff]  }
  0x94   :  { %827 = vmatpush1.bf16.msra.mxu0 %v1474_v60  ;;  %v1511_v60 = vld [vmem:[#allocation7 + $0x190] ss:$8 sps:$4 sm:$0xff]  }
  0x95   :  { %370 = vmatpush1.bf16.msra.mxu1 %v1430_v51  ;;  %828 = vmatprep.subr.bf16.mxu0 %v1475_v61  ;;  %v1505_v51 = vld [vmem:[#allocation7 + $0x170] ss:$8 sps:$4 sm:$0xff]   ;;  %v1516_v61 = vld [vmem:[#allocation7 + $0x1a4] ss:$8 sps:$4 sm:$0xff]  }
  0x96   :  { %371 = vmatprep.subr.bf16.mxu1 %v1435_v52 }
  0x98   :  { %829 = vmatpush1.bf16.msra.mxu0 %v1477_v62  ;;  %v1514_v62 = vld [vmem:[#allocation7 + $0x1a0] ss:$8 sps:$4 sm:$0xff]  }
  0x99   :  { %372 = vmatpush1.bf16.msra.mxu1 %v1433_v55  ;;  %830 = vmatprep.subr.bf16.mxu0 %v1478_v63  ;;  %v1519_v63 = vld [vmem:[#allocation7 + $0x1b4] ss:$8 sps:$4 sm:$0xff]  }
  0x9a   :  { %1316 = vmatprep.subr.bf16.mxu1 %v1532_v4  ;;  %v1525_v4 = vld [vmem:[#allocation7 + $0x1d4] ss:$8 sps:$4 sm:$0xff]  }
  0x9c   :  { %390 = vmatmul.mubr.bf16.vlgmr.msra.gmra.mrb[4].mxu1 %v1834_v25  ;;  %831 = vmatpush1.bf16.msra.mxu0 %v1480_v0  ;;  %v1517_v0 = vld [vmem:[#allocation7 + $0x1b0] ss:$8 sps:$4 sm:$0xff]  }
  0x9d   :  { %832 = vmatprep.subr.bf16.mxu0 %v1481_v1  ;;  %1317 = vmatpush3.bf16.msra.mxu1 %v1533_v5  ;;  %v1522_v1 = vld [vmem:[#allocation7 + $0x1c4] ss:$8 sps:$4 sm:$0xff]   ;;  %v1523_v5 = vld [vmem:[#allocation7 + $0x1d0] ss:$8 sps:$4 sm:$0xff]  }
  0x9e   :  { %1318 = vmatprep.subr.bf16.mxu1 %v1534_v6 }
  0xa0   :  { %833 = vmatpush1.bf16.msra.mxu0 %v1483_v2  ;;  %v1520_v2 = vld [vmem:[#allocation7 + $0x1c0] ss:$8 sps:$4 sm:$0xff]  }
  0xa1   :  { %843 = vmatprep.subr.bf16.mxu0 %v1486_v3  ;;  %1319 = vmatpush3.bf16.msra.mxu1 %v1535_v7  ;;  %v146_v3 = vsub.s32 2, %v1838_v17  ;;  %v1528_v7 = vld [vmem:[#allocation7 + $0x1e4] ss:$8 sps:$4 sm:$0xff]   ;;  %v1551_v17 = vld [vmem:[#allocation10 + $0x18] sm:$0xff]  }
  0xa2   :  { %1320 = vmatprep.subr.bf16.mxu1 %v1536_v8  ;;  %v1526_v8 = vld [vmem:[#allocation7 + $0x1e0] ss:$8 sps:$4 sm:$0xff]  }
  0xa3   :  { %v147_v6 = vrot.slane %v1844_v19, %v146_v3  ;;  %v1547_v19 = vld [vmem:[#allocation8 + $0x38] sm:$0xff]  }
  0xa5   :  { %1321 = vmatpush3.bf16.msra.mxu1 %v1537_v9 }
  0xa6   :  { %1322 = vmatprep.subr.bf16.mxu1 %v1538_v10  ;;  %v1531_v10 = vld [vmem:[#allocation7 + $0x1f4] ss:$8 sps:$4 sm:$0xff]  }
  0xa9   :  { %1323 = vmatpush3.bf16.msra.mxu1 %v1539_v11  ;;  %v1529_v11 = vld [vmem:[#allocation7 + $0x1f0] ss:$8 sps:$4 sm:$0xff]  }
  0xaa   :  { %1324 = vmatprep.subr.bf16.mxu1 %v1540_v12 }
  0xad   :  { %1325 = vmatpush3.bf16.msra.mxu1 %v1541_v13 }
  0xae   :  { %1326 = vmatprep.subr.bf16.mxu1 %v1542_v14  ;;  %v1544_v14 = vld [vmem:[#allocation8 + $0x70] sm:$0xff]  }
  0xb1   :  { %1327 = vmatpush3.bf16.msra.mxu1 %v1543_v15  ;;  %v1545_v15 = vld [vmem:[#allocation8 + $0x30] sm:$0xff]  }
  0xb2   :  { %1328 = vmatprep.subr.bf16.mxu1 %v1544_v14 }
  0xb5   :  { %1329 = vmatpush3.bf16.msra.mxu1 %v1545_v15 }
  0xb6   :  { %1330 = vmatprep.subr.bf16.mxu1 %v1546_v16 }
  0xb9   :  { %1331 = vmatpush3.bf16.msra.mxu1 %v1547_v19 }
 0x14f   :  { %v350_v23 = vpop.f32.mrb[0].mxu1 }
 0x150   :  { %v351_v24 = vadd.f32 %v350_v23, %v139_v21  ;;  %v352_v25 = vpop.f32.mrb[1].mxu1  ;;  %v1708_v21 = vmov 0.0  }
 0x151   :  { %v353_v26 = vadd.f32 %v352_v25, %v143_v22  ;;  %v354_v27 = vpop.f32.mrb[2].mxu1  ;;  %1347 = vmatprep.subr.bf16.mxu1 %v1708_v21  ;;  %v470_v22 = vld [vmem:[%s1886_s4] sm:$0x3] }
 0x152   :  { %v398_v28 = vmax.f32 %v351_v24, 0.0  ;;  %v355_v29 = vpop.f32.mrb[3].mxu1  ;;  %v475_v23 = vrot.slane %v470_v22, %v138_v18  ;;  %v479_v24 = vrot.slane %v470_v22, %v142_v20  ;;  %v1550_v18 = vld [vmem:[#allocation10 + $0x10] sm:$0xff]   ;;  %v1552_v20 = vld [vmem:[#allocation10 + $0x20] sm:$0xff]  }
 0x153   :  { %v399_v30 = vmax.f32 %v353_v26, 0.0 }
 0x154   :  { %v402_v33 = vpack.c.bf16 %v398_v28, %v398_v28 }
 0x155   :  { %v403_v31 = vpack.c.bf16 %v399_v30, %v399_v30 }
 0x157   :  { %834 = vmatprep.mubr.bf16.mxu0 %v403_v31 }
 0x158   :  { %835 = vmatmul.mubr.bf16.vlgmr.msra.gmra.mrb[0].mxu0 %v402_v33 }
 0x159   :  { %844 = vmatpush1.bf16.msra.mxu0 %v1484_v32 }
 0x15a   :  { %845 = vmatprep.subr.bf16.mxu0 %v1489_v34  ;;  %v1548_v34 = vld [vmem:[#allocation10] sm:$0xff]  }
 0x15d   :  { %846 = vmatpush1.bf16.msra.mxu0 %v1487_v35 }
 0x15e   :  { %847 = vmatprep.subr.bf16.mxu0 %v1492_v36  ;;  %v1549_v36 = vld [vmem:[#allocation10 + $0x8] sm:$0xff]  }
 0x161   :  { %848 = vmatpush1.bf16.msra.mxu0 %v1490_v37  ;;  %v1553_v37 = vld [vmem:[#allocation10 + $0x28] sm:$0xff]  }
 0x162   :  { %849 = vmatprep.subr.bf16.mxu0 %v1495_v38  ;;  %v1554_v38 = vld [vmem:[#allocation10 + $0x30] sm:$0xff]  }
 0x165   :  { %850 = vmatpush1.bf16.msra.mxu0 %v1493_v39  ;;  %v1555_v39 = vld [vmem:[#allocation10 + $0x38] sm:$0xff]  }
 0x166   :  { %851 = vmatprep.subr.bf16.mxu0 %v1498_v40 }
 0x169   :  { %852 = vmatpush1.bf16.msra.mxu0 %v1496_v41  ;;  %v1290_v41 = vld [vmem:[%s1888_s6] ss:$0 sm:$0xff]  ;;  %s1666_s6 = scalar_lea.vmem %s1184_s13, 128 }
 0x16a   :  { %853 = vmatprep.subr.bf16.mxu0 %v1501_v42  ;;  %p1667_p12 = scmp.ne.s32.totalorder %s1184_s13, %s1666_s6  ;;  %p1672_p0 = scmp.lt.s32.totalorder %s1666_s6, %s1666_s6 }
 0x16c   :  { %p1673_p1 = por %p1672_p0, %p1671_p13 }
 0x16d   :  { %854 = vmatpush1.bf16.msra.mxu0 %v1499_v43 }
 0x16e   :  { %855 = vmatprep.subr.bf16.mxu0 %v1504_v45  ;;  %p1674_p2 = pnand %p1673_p1, %p1667_p12 }
 0x16f   :  { %v391_v49 = vpop.f32.mrb[4].mxu1 }
 0x170   :  { %v393_v50 = vpop.f32.mrb[5].mxu1  ;;  %v392_v9 = vadd.f32 %v391_v49, %v147_v6  ;;  %v1307_v49 = vld [vmem:[%s1890_s8] ss:$0 sm:$0xff] }
 0x171   :  { %856 = vmatpush1.bf16.msra.mxu0 %v1502_v46  ;;  %v394_v52 = vadd.f32 %v393_v50, %v151_v47  ;;  %v395_v53 = vpop.f32.mrb[6].mxu1 }
 0x172   :  { %857 = vmatprep.subr.bf16.mxu0 %v1507_v48  ;;  %v396_v55 = vpop.f32.mrb[7].mxu1  ;;  %v400_v12 = vmax.f32 %v392_v9, 0.0 }
 0x173   :  { %v401_v56 = vmax.f32 %v394_v52, 0.0 }
 0x174   :  { %v404_v13 = vpack.c.bf16 %v400_v12, %v400_v12 }
 0x175   :  { %858 = vmatpush1.bf16.msra.mxu0 %v1505_v51  ;;  %v405_v58 = vpack.c.bf16 %v401_v56, %v401_v56 }
 0x176   :  { %859 = vmatprep.subr.bf16.mxu0 %v1510_v54 }
 0x177   :  { %875 = vmatprep.mubr.bf16.mxu0 %v405_v58 }
 0x179   :  { %860 = vmatpush1.bf16.msra.mxu0 %v1508_v57 }
 0x17a   :  { %861 = vmatprep.subr.bf16.mxu0 %v1513_v59 }
 0x17d   :  { %862 = vmatpush1.bf16.msra.mxu0 %v1511_v60 }
 0x17e   :  { %863 = vmatprep.subr.bf16.mxu0 %v1516_v61 }
 0x181   :  { %864 = vmatpush1.bf16.msra.mxu0 %v1514_v62 }
 0x182   :  { %865 = vmatprep.subr.bf16.mxu0 %v1519_v63 }
 0x185   :  { %866 = vmatpush1.bf16.msra.mxu0 %v1517_v0 }
 0x186   :  { %867 = vmatprep.subr.bf16.mxu0 %v1522_v1 }
 0x189   :  { %868 = vmatpush1.bf16.msra.mxu0 %v1520_v2 }
 0x18a   :  { %869 = vmatprep.subr.bf16.mxu0 %v1525_v4 }
 0x18d   :  { %870 = vmatpush1.bf16.msra.mxu0 %v1523_v5 }
 0x18e   :  { %871 = vmatprep.subr.bf16.mxu0 %v1528_v7 }
 0x191   :  { %872 = vmatpush1.bf16.msra.mxu0 %v1526_v8 }
 0x192   :  { %873 = vmatprep.subr.bf16.mxu0 %v1531_v10 }
 0x195   :  { %874 = vmatpush1.bf16.msra.mxu0 %v1529_v11 }
 0x198   :  { %876 = vmatmul.mubr.bf16.vlgmr.msra.gmra.mrb[0].mxu0 %v404_v13 }
 0x26b   :  { %v877_v25 = vpop.f32.mrb[0].mxu0 }
 0x26c   :  { %v1367_v26 = vadd.f32 %v877_v25, %v475_v23  ;;  %v879_v27 = vpop.f32.mrb[1].mxu0 }
 0x26d   :  { %v1368_v28 = vadd.f32 %v879_v27, %v479_v24  ;;  %v881_v29 = vpop.f32.mrb[2].mxu0 }
 0x26e   :  { %v884_v30 = vmax.f32 %v1367_v26, 0.0  ;;  %v882_v31 = vpop.f32.mrb[3].mxu0 }
 0x26f   :  { %v885_v32 = vmax.f32 %v1368_v28, 0.0 }
 0x270   :  { %v886_v35 = vpack.c.bf16 %v884_v30, %v884_v30 }
 0x271   :  { %v887_v33 = vpack.c.bf16 %v885_v32, %v885_v32 }
 0x273   :  { %1055 = vmatprep.mubr.bf16.mxu1 %v887_v33 }
 0x274   :  { %1056 = vmatmul.mubr.bf16.vlgmr.msra.gmra.mrb[8].mxu1 %v886_v35 }
 0x275   :  { %1348 = vmatpush3.bf16.msra.mxu1 %v1548_v34  ;;  %1363 = vmatprep.mubr.msk.bf16.mxu1 %vm1709_vm0, %v1708_v21 }
 0x276   :  { %1349 = vmatprep.subr.bf16.mxu1 %v1708_v21 }
 0x279   :  { %1350 = vmatpush3.bf16.msra.mxu1 %v1549_v36 }
 0x27a   :  { %1351 = vmatprep.subr.bf16.mxu1 %v1708_v21 }
 0x27d   :  { %1352 = vmatpush3.bf16.msra.mxu1 %v1550_v18 }
 0x27e   :  { %1353 = vmatprep.subr.bf16.mxu1 %v1708_v21 }
 0x281   :  { %1354 = vmatpush3.bf16.msra.mxu1 %v1551_v17 }
 0x282   :  { %1355 = vmatprep.subr.bf16.mxu1 %v1708_v21 }
 0x285   :  { %1356 = vmatpush3.bf16.msra.mxu1 %v1552_v20 }
 0x286   :  { %1357 = vmatprep.subr.bf16.mxu1 %v1708_v21 }
 0x289   :  { %1358 = vmatpush3.bf16.msra.mxu1 %v1553_v37 }
 0x28a   :  { %1359 = vmatprep.subr.bf16.mxu1 %v1708_v21 }
 0x28d   :  { %1360 = vmatpush3.bf16.msra.mxu1 %v1554_v38 }
 0x28e   :  { %1361 = vmatprep.subr.bf16.mxu1 %v1708_v21 }
 0x291   :  { %1362 = vmatpush3.bf16.msra.mxu1 %v1555_v39 }
 0x347   :  { %v1332_v40 = vpop.f32.mrb[8].mxu1 }
 0x348   :  { %v1333_v42 = vpop.f32.mrb[9].mxu1 }
 0x349   :  { %v1334_v43 = vadd.f32 %v1333_v42, %v1332_v40  ;;  %v1335_v44 = vpop.f32.mrb[10].mxu1 }
 0x34a   :  { %v1336_v45 = vpop.f32.mrb[11].mxu1 }
 0x34b   :  { %v1058_v46 = vadd.f32 %v1334_v43, %v1290_v41 }
 0x34d   :  { %v1063_v47 = vmax.f32 %v1058_v46, 0.0 }
 0x34f   :  { %v1064_v48 = vpack.c.bf16 %v1063_v47, %v1063_v47 }
 0x351   :  { %1364 = vmatmul.mubr.bf16.vlgmr.msra.gmra.mrb[12].mxu1 %v1064_v48 }
 0x424   :  { %v1170_v50 = vpop.f32.mrb[12].mxu1 }
 0x425   :  { %v1171_v51 = vadd.f32 %v1307_v49, %v1170_v50  ;;  %v1365_v52 = vpop.f32.mrb[13].mxu1 }
 0x426   :  { %v1173_v53 = vpop.f32.mrb[14].mxu1 }
 0x427   :  { %1176 = vst [vmem:[#allocation11] sm:$0xff] %v1171_v51  ;;  %v1366_v54 = vpop.f32.mrb[15].mxu1 }
 0x428   :  { %1677 = shalt.err (!%p1674_p2)
}
 0x429   :  { %s1678_s8 = scalar_lea.hbm %s1891_s9, 128 }
 0x42a   :  { %p1679_p3 = scmp.ne.s32.totalorder %s1891_s9, %s1678_s8  ;;  %p1682_p4 = scmp.lt.u32.totalorder %s1678_s8, %s1891_s9 }
 0x42c   :  { %p1684_p5 = pnand %p1682_p4, %p1679_p3 }
 0x42e   :  { %1687 = shalt.err (!%p1684_p5)
}
 0x42f   :  { %1186 = dma.vmem_to_hbm [thread:$0]  %s1184_s13, 128, %s1891_s9, [#allocation4]  }
 0x430   :  { %1694 = dma.done.wait [#allocation4], 128  }
 0x431   :  { %1695 = vsyncadd [#allocation4], 4294967168 }
 0x432   :  { %1190 = vsyncpa [#allocation3], 1 }
 0x433   :  { %1191 = vsyncpa [#allocation6], 1 }
 0x434   :  { %1192 = vsyncpa [#allocation9], 1 }
 0x435   :  { %1193 = vsyncpa [#allocation4], 1 }

</bundles_post_ra>
